<compile_context>
chip_gen: v6e
topology: v6e:2x2x1
jax: 0.10.0
libtpu: 0.0.40
codegen_flags: <defaults>
</compile_context>

<pallas_src>
import functools

import numpy as np
import jax
import jax.numpy as jnp
from jax.experimental import pallas as pl
from jax.experimental.pallas import tpu as pltpu

EPS = 1e-5
_VMEM = pl.BlockSpec(memory_space=pltpu.MemorySpace.VMEM)


def _round_up(v, m):
    return (v + m - 1) // m * m


# ----------------------------------------------------------------------------
# Fused Pallas kernel (entire Prediction.forward) — 9 matmuls total
# ----------------------------------------------------------------------------
def _prediction_kernel(x_ref, mats_ref, aux_ref, o_ref, *,
                       num_blocks, num_policy, kinp, kp):
    f32, bf16 = jnp.float32, jnp.bfloat16

    # Static, 8-aligned row offsets into the packed bf16 weight slab.
    o_mr = kinp                # residual-block 3x3 conv matrix
    o_ms = kinp + kp           # shared 1x1 conv matrix
    o_wh = kinp + 2 * kp       # fused policy+value head matrix

    m0 = mats_ref[0:kinp, :]           # [kinp, kp] bf16  (conv0 folded)
    mr = mats_ref[o_mr:o_mr + kp, :]   # [kp, kp]   bf16  (res conv folded)
    ms = mats_ref[o_ms:o_ms + kp, :]   # [kp, kp]   bf16  (1x1 conv folded)
    wh = mats_ref[o_wh:o_wh + kp, :]   # [kp, kp]   bf16  (head, cols>=P+1 zero)

    avg = aux_ref[0:kp, :]             # [kp, kp] f32 per-channel averaging matrix
    g0 = aux_ref[kp + 0:kp + 1, :]
    b0 = aux_ref[kp + 1:kp + 2, :]
    gr = aux_ref[kp + 2:kp + 3, :]
    br = aux_ref[kp + 3:kp + 4, :]
    gs = aux_ref[kp + 4:kp + 5, :]
    bs = aux_ref[kp + 5:kp + 6, :]
    bias = aux_ref[kp + 6:kp + 7, :]   # [1, kp] fused policy+value bias

    def mm(a, w_bf16):
        # bf16 operands, f32 accumulation on the MXU.
        return jnp.dot(a.astype(bf16), w_bf16, preferred_element_type=f32)

    def bn(h, g, b):
        # Training-mode BatchNorm (batch stats over H,W; biased variance).
        # Both moments via ONE f32 matmul against the block-averaging matrix.
        stats = jnp.dot(jnp.concatenate([h, h * h], axis=0), avg,
                        preferred_element_type=f32)          # [2, kp]
        mean = stats[0:1, :]
        var = stats[1:2, :] - mean * mean
        return (h - mean) * jax.lax.rsqrt(var + EPS) * g + b

    x = x_ref[...]                                            # [1, kinp] f32

    # conv0 (folded) + BN + ReLU
    act = jnp.maximum(bn(mm(x, m0), g0, b0), 0.0)             # [1, kp]

    # residual blocks (weights shared across blocks, as in the reference)
    for _ in range(num_blocks):
        act = jnp.maximum(act + bn(mm(act, mr), gr, br), 0.0)

    # shared 1x1 conv (folded) + BN + ReLU
    act = jnp.maximum(bn(mm(act, ms), gs, bs), 0.0)

    # fused policy/value head: one matmul + bias, then masked softmax / tanh
    logits = mm(act, wh) + bias                               # [1, kp]
    col = jax.lax.broadcasted_iota(jnp.int32, logits.shape, 1)
    is_pol = col < num_policy
    is_val = col == num_policy
    mx = jnp.max(jnp.where(is_pol, logits, -1e30), axis=-1, keepdims=True)
    e = jnp.where(is_pol, jnp.exp(logits - mx), 0.0)
    policy = e / jnp.sum(e, axis=-1, keepdims=True)           # exact normalize
    out = jnp.where(is_pol, policy, jnp.where(is_val, jnp.tanh(logits), 0.0))
    # lanes [0, P): softmax(policy logits); lane P: tanh(value logit)
    o_ref[...] = out[:, :num_policy + 1]


# ----------------------------------------------------------------------------
# Forward pass: one jitted function wrapping a single pallas_call
# ----------------------------------------------------------------------------
@functools.partial(jax.jit, static_argnames=("num_blocks", "policy_output_size"))
def prediction_forward(kparams, x_nchw, num_blocks, policy_output_size):
    n, c, h, w = x_nchw.shape
    assert n == 1, "torch.flatten(x) semantics require batch == 1"
    kin = c * h * w
    kp = kparams["aux"].shape[1]                   # padded latent*HW width
    kinp = kparams["mats"].shape[0] - 3 * kp       # padded channels_in*HW width
    # NCHW (N==1) row-major flatten -> [1, Cin*HW], zero-padded to the slab width
    x_row = jnp.pad(x_nchw.reshape(1, kin).astype(jnp.float32),
                    ((0, 0), (0, kinp - kin)))
    out = pl.pallas_call(
        functools.partial(_prediction_kernel, num_blocks=num_blocks,
                          num_policy=policy_output_size, kinp=kinp, kp=kp),
        out_shape=jax.ShapeDtypeStruct((1, policy_output_size + 1), jnp.float32),
        in_specs=[_VMEM, _VMEM, _VMEM],
        out_specs=_VMEM,
    )(x_row, kparams["mats"], kparams["aux"])
    return out[0, :policy_output_size], out[0, policy_output_size:]


# ----------------------------------------------------------------------------
# One-time parameter preparation (all layout / fold work hoisted out of forward)
# ----------------------------------------------------------------------------
def _shift_matrices(h, w):
    """G[k][p, q] = 1 iff q is the k-th 3x3 neighbour of p (zero-padded conv)."""
    hw = h * w
    g = np.zeros((9, hw, hw), np.float32)
    for dy in range(3):
        for dx in range(3):
            k = dy * 3 + dx
            for y in range(h):
                for x in range(w):
                    iy, ix = y + dy - 1, x + dx - 1
                    if 0 <= iy < h and 0 <= ix < w:
                        g[k, y * w + x, iy * w + ix] = 1.0
    return g


def init_params(key, channels_in, policy_output_size, latent_dim, latent_size):
    """PyTorch-layout parameters (conv [Cout,Cin,kh,kw], linear [out,in])."""
    ks = jax.random.split(key, 8)
    nrm = jax.random.normal
    return {
        "conv0_w": 0.1 * nrm(ks[0], (latent_dim, channels_in, 3, 3), jnp.float32),
        "conv0_gamma": jnp.ones((latent_dim,), jnp.float32),
        "conv0_beta": jnp.zeros((latent_dim,), jnp.float32),
        # single shared residual block (the ModuleList repeats one module)
        "res_w": 0.1 * nrm(ks[1], (latent_dim, latent_dim, 3, 3), jnp.float32),
        "res_gamma": 1.0 + 0.05 * nrm(ks[2], (latent_dim,), jnp.float32),
        "res_beta": 0.05 * nrm(ks[3], (latent_dim,), jnp.float32),
        "shared_w": 0.1 * nrm(ks[4], (latent_dim, latent_dim, 1, 1), jnp.float32),
        "shared_gamma": jnp.ones((latent_dim,), jnp.float32),
        "shared_beta": jnp.zeros((latent_dim,), jnp.float32),
        "policy_w": 0.1 * nrm(ks[5], (policy_output_size, latent_size), jnp.float32),
        "policy_b": jnp.zeros((policy_output_size,), jnp.float32),
        "value_w": 0.1 * nrm(ks[6], (1, latent_size), jnp.float32),
        "value_b": jnp.zeros((1,), jnp.float32),
    }


def prepare_kernel_params(params, size_h, size_w):
    """Fold convs into dense matrices and pack everything into two slabs."""
    hw = size_h * size_w
    w0 = np.asarray(params["conv0_w"], np.float32)
    latent, cin = w0.shape[0], w0.shape[1]
    K = latent * hw
    kin = cin * hw
    kp = _round_up(K, 8)
    kinp = _round_up(kin, 8)
    pw = np.asarray(params["policy_w"], np.float32)
    vw = np.asarray(params["value_w"], np.float32)
    num_policy = pw.shape[0]
    assert pw.shape[1] == K and num_policy + 1 <= kp

    G = _shift_matrices(size_h, size_w)                      # [9, HW, HW]

    def conv3x3_matT(w_oi33):
        # Fold 3x3 conv (padding=1) into M^T [Cin*HW, Cout*HW]:
        # M[(co,p),(ci,q)] = sum_k W[co,ci,k] * G[k,p,q]
        ww = np.asarray(w_oi33, np.float32)
        co, ci = ww.shape[:2]
        wk = ww.reshape(co, ci, 9)
        m = np.einsum("ock,kpq->opcq", wk, G).reshape(co * hw, ci * hw)
        return np.ascontiguousarray(m.T)

    def pad2(a, rows, cols):
        out = np.zeros((rows, cols), np.float32)
        out[:a.shape[0], :a.shape[1]] = a
        return out

    m0T = pad2(conv3x3_matT(w0), kinp, kp)                   # [kinp, kp]
    mrT = pad2(conv3x3_matT(params["res_w"]), kp, kp)        # [kp, kp]
    msT = pad2(np.kron(np.asarray(params["shared_w"], np.float32)[:, :, 0, 0],
                       np.eye(hw, dtype=np.float32)).T, kp, kp)
    # Head rows are already in torch.flatten [C, H, W] order.
    whT = pad2(np.concatenate([pw, vw], axis=0).T, kp, kp)   # [kp, kp]
    mats = np.concatenate([m0T, mrT, msT, whT], axis=0)      # [kinp + 3*kp, kp]

    # Per-channel block-averaging matrix for BN statistics (zero-padded lanes
    # stay exactly zero through BN/ReLU/residual/head).
    avg = pad2(np.kron(np.eye(latent, dtype=np.float32),
                       np.full((hw, hw), 1.0 / hw, np.float32)), kp, kp)
    vec = np.zeros((8, kp), np.float32)

    def rep(v):
        return np.repeat(np.asarray(v, np.float32), hw)      # (c,q) order

    vec[0, :K] = rep(params["conv0_gamma"])
    vec[1, :K] = rep(params["conv0_beta"])
    vec[2, :K] = rep(params["res_gamma"])
    vec[3, :K] = rep(params["res_beta"])
    vec[4, :K] = rep(params["shared_gamma"])
    vec[5, :K] = rep(params["shared_beta"])
    vec[6, :num_policy] = np.asarray(params["policy_b"], np.float32)
    vec[6, num_policy] = float(np.asarray(params["value_b"], np.float32)[0])
    aux = np.concatenate([avg, vec], axis=0)                 # [kp + 8, kp]

    return {"mats": jnp.asarray(mats, jnp.bfloat16),         # MXU operand slab
            "aux": jnp.asarray(aux, jnp.float32)}            # BN / bias slab


# ----------------------------------------------------------------------------
if __name__ == "__main__":
    num_blocks = 2
    channels_in = 3
    size_x = size_y = 3
    policy_output_size = 9
    latent_dim = 4
    latent_size = latent_dim * size_x * size_y

    key = jax.random.PRNGKey(0)
    k_params, k_x = jax.random.split(key)
    params = init_params(k_params, channels_in, policy_output_size,
                         latent_dim, latent_size)
    kparams = prepare_kernel_params(params, size_y, size_x)  # one-time layout hoist
    x = jax.random.normal(k_x, (1, channels_in, size_y, size_x), jnp.float32)

    policy, value = prediction_forward(kparams, x, num_blocks, policy_output_size)
    jax.block_until_ready((policy, value))

    assert policy.shape == (policy_output_size,)
    assert value.shape == (1,)
    assert jnp.isfinite(policy).all() and jnp.isfinite(value).all()
    assert abs(float(jnp.sum(policy)) - 1.0) < 1e-3           # softmax sanity
    assert float(jnp.abs(value[0])) <= 1.0 + 1e-6             # tanh sanity
    print("KERNEL_OK")
</pallas_src>

<mosaic_0001>
module attributes {stable_mosaic.version = 11 : i64} {
  func.func @_prediction_kernel(%arg0: memref<1x32xf32, #tpu.memory_space<vmem>>, %arg1: memref<152x40xbf16, #tpu.memory_space<vmem>>, %arg2: memref<48x40xf32, #tpu.memory_space<vmem>>, %arg3: memref<1x10xf32, #tpu.memory_space<vmem>>) attributes {dimension_semantics = [], scalar_prefetch = 0 : i64, scratch_operands = 0 : i64, tpu.core_type = #tpu.core_type<tc>} {
    %c0 = arith.constant 0 : index
    %c0_0 = arith.constant 0 : index
    %0 = vector.load %arg1[%c0, %c0_0] : memref<152x40xbf16, #tpu.memory_space<vmem>>, vector<32x40xbf16>
    %c32 = arith.constant 32 : index
    %c0_1 = arith.constant 0 : index
    %1 = vector.load %arg1[%c32, %c0_1] : memref<152x40xbf16, #tpu.memory_space<vmem>>, vector<40x40xbf16>
    %c72 = arith.constant 72 : index
    %c0_2 = arith.constant 0 : index
    %2 = vector.load %arg1[%c72, %c0_2] : memref<152x40xbf16, #tpu.memory_space<vmem>>, vector<40x40xbf16>
    %c112 = arith.constant 112 : index
    %c0_3 = arith.constant 0 : index
    %3 = vector.load %arg1[%c112, %c0_3] : memref<152x40xbf16, #tpu.memory_space<vmem>>, vector<40x40xbf16>
    %c0_4 = arith.constant 0 : index
    %c0_5 = arith.constant 0 : index
    %4 = vector.load %arg2[%c0_4, %c0_5] : memref<48x40xf32, #tpu.memory_space<vmem>>, vector<40x40xf32>
    %c40 = arith.constant 40 : index
    %c0_6 = arith.constant 0 : index
    %5 = vector.load %arg2[%c40, %c0_6] : memref<48x40xf32, #tpu.memory_space<vmem>>, vector<1x40xf32>
    %c41 = arith.constant 41 : index
    %c0_7 = arith.constant 0 : index
    %6 = vector.load %arg2[%c41, %c0_7] : memref<48x40xf32, #tpu.memory_space<vmem>>, vector<1x40xf32>
    %c42 = arith.constant 42 : index
    %c0_8 = arith.constant 0 : index
    %7 = vector.load %arg2[%c42, %c0_8] : memref<48x40xf32, #tpu.memory_space<vmem>>, vector<1x40xf32>
    %c43 = arith.constant 43 : index
    %c0_9 = arith.constant 0 : index
    %8 = vector.load %arg2[%c43, %c0_9] : memref<48x40xf32, #tpu.memory_space<vmem>>, vector<1x40xf32>
    %c44 = arith.constant 44 : index
    %c0_10 = arith.constant 0 : index
    %9 = vector.load %arg2[%c44, %c0_10] : memref<48x40xf32, #tpu.memory_space<vmem>>, vector<1x40xf32>
    %c45 = arith.constant 45 : index
    %c0_11 = arith.constant 0 : index
    %10 = vector.load %arg2[%c45, %c0_11] : memref<48x40xf32, #tpu.memory_space<vmem>>, vector<1x40xf32>
    %c46 = arith.constant 46 : index
    %c0_12 = arith.constant 0 : index
    %11 = vector.load %arg2[%c46, %c0_12] : memref<48x40xf32, #tpu.memory_space<vmem>>, vector<1x40xf32>
    %c0_13 = arith.constant 0 : index
    %c0_14 = arith.constant 0 : index
    %12 = vector.load %arg0[%c0_13, %c0_14] : memref<1x32xf32, #tpu.memory_space<vmem>>, vector<1x32xf32>
    %13 = arith.truncf %12 : vector<1x32xf32> to vector<1x32xbf16>
    %cst = arith.constant dense<0.000000e+00> : vector<1x40xf32>
    %14 = tpu.matmul %13, %0, %cst {dimension_numbers = #tpu.dot_dimension_numbers<[1], [0], [0], [1], [0, 0, 1, 1], [], []>} : vector<1x32xbf16>, vector<32x40xbf16>, vector<1x40xf32> -> vector<1x40xf32>
    %15 = arith.mulf %14, %14 : vector<1x40xf32>
    %16 = tpu.concatenate %14, %15 in 0 : vector<1x40xf32>, vector<1x40xf32> -> vector<2x40xf32>
    %cst_15 = arith.constant dense<0.000000e+00> : vector<2x40xf32>
    %17 = tpu.matmul %16, %4, %cst_15 {dimension_numbers = #tpu.dot_dimension_numbers<[1], [0], [0], [1], [0, 0, 1, 1], [], []>} : vector<2x40xf32>, vector<40x40xf32>, vector<2x40xf32> -> vector<2x40xf32>
    %18 = vector.extract_strided_slice %17 {offsets = [0, 0], sizes = [1, 40], strides = [1, 1]} : vector<2x40xf32> to vector<1x40xf32>
    %19 = vector.extract_strided_slice %17 {offsets = [1, 0], sizes = [1, 40], strides = [1, 1]} : vector<2x40xf32> to vector<1x40xf32>
    %20 = arith.mulf %18, %18 : vector<1x40xf32>
    %21 = arith.subf %19, %20 : vector<1x40xf32>
    %22 = arith.subf %14, %18 : vector<1x40xf32>
    %cst_16 = arith.constant 9.99999974E-6 : f32
    %23 = vector.broadcast %cst_16 : f32 to vector<1x40xf32>
    %24 = arith.addf %21, %23 : vector<1x40xf32>
    %25 = math.rsqrt %24 : vector<1x40xf32>
    %26 = arith.mulf %22, %25 : vector<1x40xf32>
    %27 = arith.mulf %26, %5 : vector<1x40xf32>
    %28 = arith.addf %27, %6 : vector<1x40xf32>
    %cst_17 = arith.constant 0.000000e+00 : f32
    %29 = vector.broadcast %cst_17 : f32 to vector<1x40xf32>
    %30 = arith.maximumf %28, %29 : vector<1x40xf32>
    %31 = arith.truncf %30 : vector<1x40xf32> to vector<1x40xbf16>
    %cst_18 = arith.constant dense<0.000000e+00> : vector<1x40xf32>
    %32 = tpu.matmul %31, %1, %cst_18 {dimension_numbers = #tpu.dot_dimension_numbers<[1], [0], [0], [1], [0, 0, 1, 1], [], []>} : vector<1x40xbf16>, vector<40x40xbf16>, vector<1x40xf32> -> vector<1x40xf32>
    %33 = arith.mulf %32, %32 : vector<1x40xf32>
    %34 = tpu.concatenate %32, %33 in 0 : vector<1x40xf32>, vector<1x40xf32> -> vector<2x40xf32>
    %cst_19 = arith.constant dense<0.000000e+00> : vector<2x40xf32>
    %35 = tpu.matmul %34, %4, %cst_19 {dimension_numbers = #tpu.dot_dimension_numbers<[1], [0], [0], [1], [0, 0, 1, 1], [], []>} : vector<2x40xf32>, vector<40x40xf32>, vector<2x40xf32> -> vector<2x40xf32>
    %36 = vector.extract_strided_slice %35 {offsets = [0, 0], sizes = [1, 40], strides = [1, 1]} : vector<2x40xf32> to vector<1x40xf32>
    %37 = vector.extract_strided_slice %35 {offsets = [1, 0], sizes = [1, 40], strides = [1, 1]} : vector<2x40xf32> to vector<1x40xf32>
    %38 = arith.mulf %36, %36 : vector<1x40xf32>
    %39 = arith.subf %37, %38 : vector<1x40xf32>
    %40 = arith.subf %32, %36 : vector<1x40xf32>
    %cst_20 = arith.constant 9.99999974E-6 : f32
    %41 = vector.broadcast %cst_20 : f32 to vector<1x40xf32>
    %42 = arith.addf %39, %41 : vector<1x40xf32>
    %43 = math.rsqrt %42 : vector<1x40xf32>
    %44 = arith.mulf %40, %43 : vector<1x40xf32>
    %45 = arith.mulf %44, %7 : vector<1x40xf32>
    %46 = arith.addf %45, %8 : vector<1x40xf32>
    %47 = arith.addf %30, %46 : vector<1x40xf32>
    %cst_21 = arith.constant 0.000000e+00 : f32
    %48 = vector.broadcast %cst_21 : f32 to vector<1x40xf32>
    %49 = arith.maximumf %47, %48 : vector<1x40xf32>
    %50 = arith.truncf %49 : vector<1x40xf32> to vector<1x40xbf16>
    %cst_22 = arith.constant dense<0.000000e+00> : vector<1x40xf32>
    %51 = tpu.matmul %50, %1, %cst_22 {dimension_numbers = #tpu.dot_dimension_numbers<[1], [0], [0], [1], [0, 0, 1, 1], [], []>} : vector<1x40xbf16>, vector<40x40xbf16>, vector<1x40xf32> -> vector<1x40xf32>
    %52 = arith.mulf %51, %51 : vector<1x40xf32>
    %53 = tpu.concatenate %51, %52 in 0 : vector<1x40xf32>, vector<1x40xf32> -> vector<2x40xf32>
    %cst_23 = arith.constant dense<0.000000e+00> : vector<2x40xf32>
    %54 = tpu.matmul %53, %4, %cst_23 {dimension_numbers = #tpu.dot_dimension_numbers<[1], [0], [0], [1], [0, 0, 1, 1], [], []>} : vector<2x40xf32>, vector<40x40xf32>, vector<2x40xf32> -> vector<2x40xf32>
    %55 = vector.extract_strided_slice %54 {offsets = [0, 0], sizes = [1, 40], strides = [1, 1]} : vector<2x40xf32> to vector<1x40xf32>
    %56 = vector.extract_strided_slice %54 {offsets = [1, 0], sizes = [1, 40], strides = [1, 1]} : vector<2x40xf32> to vector<1x40xf32>
    %57 = arith.mulf %55, %55 : vector<1x40xf32>
    %58 = arith.subf %56, %57 : vector<1x40xf32>
    %59 = arith.subf %51, %55 : vector<1x40xf32>
    %cst_24 = arith.constant 9.99999974E-6 : f32
    %60 = vector.broadcast %cst_24 : f32 to vector<1x40xf32>
    %61 = arith.addf %58, %60 : vector<1x40xf32>
    %62 = math.rsqrt %61 : vector<1x40xf32>
    %63 = arith.mulf %59, %62 : vector<1x40xf32>
    %64 = arith.mulf %63, %7 : vector<1x40xf32>
    %65 = arith.addf %64, %8 : vector<1x40xf32>
    %66 = arith.addf %49, %65 : vector<1x40xf32>
    %cst_25 = arith.constant 0.000000e+00 : f32
    %67 = vector.broadcast %cst_25 : f32 to vector<1x40xf32>
    %68 = arith.maximumf %66, %67 : vector<1x40xf32>
    %69 = arith.truncf %68 : vector<1x40xf32> to vector<1x40xbf16>
    %cst_26 = arith.constant dense<0.000000e+00> : vector<1x40xf32>
    %70 = tpu.matmul %69, %2, %cst_26 {dimension_numbers = #tpu.dot_dimension_numbers<[1], [0], [0], [1], [0, 0, 1, 1], [], []>} : vector<1x40xbf16>, vector<40x40xbf16>, vector<1x40xf32> -> vector<1x40xf32>
    %71 = arith.mulf %70, %70 : vector<1x40xf32>
    %72 = tpu.concatenate %70, %71 in 0 : vector<1x40xf32>, vector<1x40xf32> -> vector<2x40xf32>
    %cst_27 = arith.constant dense<0.000000e+00> : vector<2x40xf32>
    %73 = tpu.matmul %72, %4, %cst_27 {dimension_numbers = #tpu.dot_dimension_numbers<[1], [0], [0], [1], [0, 0, 1, 1], [], []>} : vector<2x40xf32>, vector<40x40xf32>, vector<2x40xf32> -> vector<2x40xf32>
    %74 = vector.extract_strided_slice %73 {offsets = [0, 0], sizes = [1, 40], strides = [1, 1]} : vector<2x40xf32> to vector<1x40xf32>
    %75 = vector.extract_strided_slice %73 {offsets = [1, 0], sizes = [1, 40], strides = [1, 1]} : vector<2x40xf32> to vector<1x40xf32>
    %76 = arith.mulf %74, %74 : vector<1x40xf32>
    %77 = arith.subf %75, %76 : vector<1x40xf32>
    %78 = arith.subf %70, %74 : vector<1x40xf32>
    %cst_28 = arith.constant 9.99999974E-6 : f32
    %79 = vector.broadcast %cst_28 : f32 to vector<1x40xf32>
    %80 = arith.addf %77, %79 : vector<1x40xf32>
    %81 = math.rsqrt %80 : vector<1x40xf32>
    %82 = arith.mulf %78, %81 : vector<1x40xf32>
    %83 = arith.mulf %82, %9 : vector<1x40xf32>
    %84 = arith.addf %83, %10 : vector<1x40xf32>
    %cst_29 = arith.constant 0.000000e+00 : f32
    %85 = vector.broadcast %cst_29 : f32 to vector<1x40xf32>
    %86 = arith.maximumf %84, %85 : vector<1x40xf32>
    %87 = arith.truncf %86 : vector<1x40xf32> to vector<1x40xbf16>
    %cst_30 = arith.constant dense<0.000000e+00> : vector<1x40xf32>
    %88 = tpu.matmul %87, %3, %cst_30 {dimension_numbers = #tpu.dot_dimension_numbers<[1], [0], [0], [1], [0, 0, 1, 1], [], []>} : vector<1x40xbf16>, vector<40x40xbf16>, vector<1x40xf32> -> vector<1x40xf32>
    %89 = arith.addf %88, %11 : vector<1x40xf32>
    %90 = tpu.iota {dimensions = array<i32: 1>} : vector<1x40xi32>
    %c9_i32 = arith.constant 9 : i32
    %91 = vector.broadcast %c9_i32 : i32 to vector<1x40xi32>
    %92 = arith.cmpi slt, %90, %91 : vector<1x40xi32>
    %c9_i32_31 = arith.constant 9 : i32
    %93 = vector.broadcast %c9_i32_31 : i32 to vector<1x40xi32>
    %94 = arith.cmpi eq, %90, %93 : vector<1x40xi32>
    %cst_32 = arith.constant -1.000000e+30 : f32
    %95 = vector.broadcast %cst_32 : f32 to vector<1x40xf32>
    %96 = arith.select %92, %89, %95 : vector<1x40xi1>, vector<1x40xf32>
    %cst_33 = arith.constant dense<0xFF800000> : vector<1xf32>
    %97 = vector.multi_reduction <maximumf>, %96, %cst_33 [1] : vector<1x40xf32> to vector<1xf32>
    %98 = vector.shape_cast %97 : vector<1xf32> to vector<1x1xf32>
    %99 = vector.broadcast %98 : vector<1x1xf32> to vector<1x40xf32>
    %100 = arith.subf %89, %99 : vector<1x40xf32>
    %101 = math.exp %100 : vector<1x40xf32>
    %cst_34 = arith.constant 0.000000e+00 : f32
    %102 = vector.broadcast %cst_34 : f32 to vector<1x40xf32>
    %103 = arith.select %92, %101, %102 : vector<1x40xi1>, vector<1x40xf32>
    %cst_35 = arith.constant dense<0.000000e+00> : vector<1xf32>
    %104 = vector.multi_reduction <add>, %103, %cst_35 [1] : vector<1x40xf32> to vector<1xf32>
    %105 = vector.shape_cast %104 : vector<1xf32> to vector<1x1xf32>
    %106 = vector.broadcast %105 : vector<1x1xf32> to vector<1x40xf32>
    %107 = arith.divf %103, %106 : vector<1x40xf32>
    %108 = math.tanh %89 : vector<1x40xf32>
    %cst_36 = arith.constant 0.000000e+00 : f32
    %109 = vector.broadcast %cst_36 : f32 to vector<1x40xf32>
    %110 = arith.select %94, %108, %109 : vector<1x40xi1>, vector<1x40xf32>
    %111 = arith.select %92, %107, %110 : vector<1x40xi1>, vector<1x40xf32>
    %112 = vector.extract_strided_slice %111 {offsets = [0, 0], sizes = [1, 10], strides = [1, 1]} : vector<1x40xf32> to vector<1x10xf32>
    %c0_37 = arith.constant 0 : index
    %c0_38 = arith.constant 0 : index
    %113 = vector.load %arg3[%c0_37, %c0_38] : memref<1x10xf32, #tpu.memory_space<vmem>>, vector<1x10xf32>
    tpu.vector_store %arg3[%c0_37, %c0_38], %112 {strides = array<i32>} : memref<1x10xf32, #tpu.memory_space<vmem>>, vector<1x10xf32>,
    return
  }
}

</mosaic_0001>

<bundles_post_ra>
// kernel: prediction_forward.1
= control target key start
LH: loop header
LB: loop body
LE: loop exit
PB: predicated region body
PF: predicated region fallthrough
CT: control target
= control target key end

     0   :  { %v928_v0 = vmov 0.0   ;;  %vm929_vm0 = vmmov 0   ;;  %vm60_vm1 = vcmask 261120   ;;  %vm108_vm2 = vcmask 1040384   ;;  %s1125_s1 = inlined_call_operand.vmem [shape: bf16[152,40], index: 1, kind: input, shape index: {}]   ;;  %s1126_s0 = inlined_call_operand.vmem [shape: f32[1,32], index: 0, kind: input, shape index: {}]   ;;  %s1127_s2 = inlined_call_operand.vmem [shape: f32[48,40], index: 2, kind: input, shape index: {}]   ;;  %s1128_s3 = inlined_call_operand.vmem [shape: f32[1,10], index: 3, kind: output, shape index: {}]  }
   0x1   :  { %801 = vmatprep.subr.bf16.mxu0 %v928_v0  ;;  %v903_v1 = vld [vmem:[%s1125_s1 + $0x8] sm:$0xff]   ;;  %805 = vmatprep.mubr.msk.bf16.mxu0 %vm929_vm0, %v928_v0  ;;  %v904_v2 = vld [vmem:[%s1125_s1] sm:$0xff]   ;;  %v973_v5 = vld [vmem:[%s1127_s2 + $0x18] sm:$0xff]  ;;  %vm110_vm3 = vcmask 326656   ;;  %vm218_vm4 = vcmask 1043456   ;;  %vm716_vm6 = vcmask 319488  }
   0x2   :  { %809 = vmatprep.subr.mxu1 %v928_v0  ;;  %819 = vmatprep.mubr.msk.f32.mxu1 %vm929_vm0, %v928_v0  ;;  %v46_v3 = vld [vmem:[%s1126_s0] sm:$0x1]  ;;  %v986_v7 = vld [vmem:[%s1127_s2 + $0x10] sm:$0xff]  ;;  %v993_v8 = vld [vmem:[%s1127_s2 + $0x8] sm:$0xff]  ;;  %vm732_vm8 = vcmask 73728  }
   0x3   :  { %802 = vmatpush3.bf16.msra.mxu0 %v903_v1  ;;  %v968_v4 = vld [vmem:[%s1127_s2 + $0x20] sm:$0xff]  ;;  %v47_v6 = vpack.c.bf16 %v46_v3, %v46_v3  ;;  %v906_v19 = vld [vmem:[%s1125_s1 + $0x18] sm:$0xff]   ;;  %v907_v20 = vld [vmem:[%s1125_s1 + $0x10] sm:$0xff]  }
   0x4   :  { %803 = vmatprep.subr.bf16.mxu0 %v928_v0  ;;  %810 = vmatpush3.msra.mxu1 %v968_v4  ;;  %v1000_v9 = vld [vmem:[%s1127_s2] sm:$0xff]  ;;  %v39_v30 = vld [vmem:[%s1127_s2 + $0x28] sm:$0x1]  ;;  %v40_v32 = vld [vmem:[%s1127_s2 + $0x29] sm:$0x1] }
   0x5   :  { %811 = vmatprep.subr.mxu1 %v928_v0  ;;  %v905_v17 = vld [vmem:[%s1125_s1 + $0x20] ss:$0 sps:$4 sm:$0xff]   ;;  %v41_v53 = vld [vmem:[%s1127_s2 + $0x2a] sm:$0x1]  ;;  %v42_v55 = vld [vmem:[%s1127_s2 + $0x2b] sm:$0x1] }
   0x6   :  { %812 = vmatpush3.msra.mxu1 %v973_v5  ;;  %v220_v18 = vsel %vm218_vm4, %v905_v17, 0 }
   0x7   :  { %804 = vmatpush3.bf16.msra.mxu0 %v904_v2  ;;  %813 = vmatprep.subr.mxu1 %v928_v0 }
   0x8   :  { %822 = vmatprep.subr.bf16.mxu0 %v928_v0  ;;  %814 = vmatpush3.msra.mxu1 %v986_v7 }
   0x9   :  { %815 = vmatprep.subr.mxu1 %v928_v0 }
   0xa   :  { %806 = vmatmul.mubr.msk.bf16.vlgmr.msra.gmra.mxu0 %vm60_vm1, %v47_v6  ;;  %816 = vmatpush3.msra.mxu1 %v993_v8 }
   0xb   :  { %828 = vmatprep.mubr.msk.bf16.mxu0 %vm929_vm0, %v928_v0  ;;  %817 = vmatprep.subr.mxu1 %v928_v0 }
   0xc   :  { %818 = vmatpush3.msra.mxu1 %v1000_v9  ;;  %823 = vmatpush3.bf16.msra.mxu0 %v220_v18 }
   0xd   :  { %832 = vmatprep.subr.mxu1 %v928_v0  ;;  %824 = vmatprep.subr.bf16.mxu0 %v928_v0 }
  0x10   :  { %825 = vmatpush3.bf16.msra.mxu0 %v906_v19 }
  0x11   :  { %826 = vmatprep.subr.bf16.mxu0 %v928_v0 }
  0x14   :  { %827 = vmatpush3.bf16.msra.mxu0 %v907_v20 }
  0x15   :  { %845 = vmatprep.subr.bf16.mxu0 %v928_v0 }
  0xca   :  { %v98_v10 = vpop.f32.mrf.mxu0 }
  0xcb   :  { %v104_v11 = vmul.f32 %v98_v10, %v98_v10 }
  0xcc   :  { %v807_v12 = vpop.f32.mrf.mxu0 }
  0xcd   :  { %v106_v13 = vrot.slane %v104_v11, 7  ;;  %v909_v12 = vld [vmem:[%s1125_s1 + $0x2c] sm:$0xff]  }
  0xce   :  { %v101_v14 = vpop.f32.mrf.mxu0 }
  0xcf   :  { %v109_v15 = vsel %vm108_vm2, %v98_v10, %v106_v13  ;;  %v910_v13 = vld [vmem:[%s1125_s1 + $0x24] sm:$0xff]  }
  0xd0   :  { %v808_v16 = vpop.f32.mrf.mxu0  ;;  %820 = vmatmul.mubr.msk.f32.vlgmr.msra.gmra.mxu1 %vm110_vm3, %v109_v15 }
  0xd1   :  { %833 = vmatpush3.msra.mxu1 %v968_v4  ;;  %842 = vmatprep.mubr.msk.f32.mxu1 %vm929_vm0, %v928_v0 }
  0xd2   :  { %834 = vmatprep.subr.mxu1 %v928_v0 }
  0xd3   :  { %835 = vmatpush3.msra.mxu1 %v973_v5 }
  0xd4   :  { %836 = vmatprep.subr.mxu1 %v928_v0 }
  0xd5   :  { %837 = vmatpush3.msra.mxu1 %v986_v7 }
  0xd6   :  { %838 = vmatprep.subr.mxu1 %v928_v0 }
  0xd7   :  { %839 = vmatpush3.msra.mxu1 %v993_v8 }
  0xd8   :  { %840 = vmatprep.subr.mxu1 %v928_v0 }
  0xd9   :  { %841 = vmatpush3.msra.mxu1 %v1000_v9 }
  0xda   :  { %855 = vmatprep.subr.mxu1 %v928_v0 }
 0x190   :  { %v180_v21 = vpop.f32.mrf.mxu1 }
 0x191   :  { %v184_v22 = vmul.f32 %v180_v21, %v180_v21  ;;  %v189_v28 = vsub.f32 %v98_v10, %v180_v21  ;;  %v908_v10 = vld [vmem:[%s1125_s1 + $0x34] ss:$0 sps:$4 sm:$0xff]  }
 0x192   :  { %v821_v23 = vpop.f32.mrf.mxu1  ;;  %v514_v11 = vsel %vm218_vm4, %v908_v10, 0 }
 0x193   :  { %v186_v24 = vrot.slane %v184_v22, 7 }
 0x195   :  { %v188_v25 = vsub.f32 %v180_v21, %v186_v24 }
 0x197   :  { %v190_v26 = vadd.f32 1e-05, %v188_v25 }
 0x199   :  { %914 = vrsqrt.f32 %v190_v26 }
 0x1a6   :  { %v915_v27 = vpop.eup %914 }
 0x1a7   :  { %v193_v29 = vrot.slane %v915_v27, 1 }
 0x1a9   :  { %v195_v31 = vmul.f32 %v193_v29, %v189_v28 }
 0x1ab   :  { %v196_v33 = vmul.f32 %v195_v31, %v39_v30 }
 0x1ad   :  { %v197_v34 = vadd.f32 %v196_v33, %v40_v32 }
 0x1af   :  { %v198_v35 = vmax.f32 %v197_v34, 0.0  ;;  %v913_v34 = vld [vmem:[%s1125_s1 + $0x38] sm:$0xff]  }
 0x1b1   :  { %v199_v36 = vpack.c.bf16 %v198_v35, %v198_v35 }
 0x1b3   :  { %829 = vmatmul.mubr.msk.bf16.vlgmr.msra.gmra.mxu0 %vm110_vm3, %v199_v36 }
 0x1b4   :  { %846 = vmatpush3.bf16.msra.mxu0 %v220_v18  ;;  %851 = vmatprep.mubr.msk.bf16.mxu0 %vm929_vm0, %v928_v0 }
 0x1b5   :  { %847 = vmatprep.subr.bf16.mxu0 %v928_v0 }
 0x1b8   :  { %848 = vmatpush3.bf16.msra.mxu0 %v906_v19 }
 0x1b9   :  { %849 = vmatprep.subr.bf16.mxu0 %v928_v0 }
 0x1bc   :  { %850 = vmatpush3.bf16.msra.mxu0 %v907_v20 }
 0x1bd   :  { %891 = vmatprep.subr.bf16.mxu0 %v928_v0 }
 0x273   :  { %v256_v37 = vpop.f32.mrf.mxu0 }
 0x274   :  { %v262_v38 = vmul.f32 %v256_v37, %v256_v37 }
 0x275   :  { %v830_v39 = vpop.f32.mrf.mxu0 }
 0x276   :  { %v264_v40 = vrot.slane %v262_v38, 7 }
 0x277   :  { %v259_v41 = vpop.f32.mrf.mxu0 }
 0x278   :  { %v266_v42 = vsel %vm108_vm2, %v256_v37, %v264_v40 }
 0x279   :  { %v831_v43 = vpop.f32.mrf.mxu0  ;;  %843 = vmatmul.mubr.msk.f32.vlgmr.msra.gmra.mxu1 %vm110_vm3, %v266_v42 }
 0x27a   :  { %856 = vmatpush3.msra.mxu1 %v968_v4  ;;  %865 = vmatprep.mubr.msk.f32.mxu1 %vm929_vm0, %v928_v0 }
 0x27b   :  { %857 = vmatprep.subr.mxu1 %v928_v0 }
 0x27c   :  { %858 = vmatpush3.msra.mxu1 %v973_v5 }
 0x27d   :  { %859 = vmatprep.subr.mxu1 %v928_v0 }
 0x27e   :  { %860 = vmatpush3.msra.mxu1 %v986_v7 }
 0x27f   :  { %861 = vmatprep.subr.mxu1 %v928_v0 }
 0x280   :  { %862 = vmatpush3.msra.mxu1 %v993_v8 }
 0x281   :  { %863 = vmatprep.subr.mxu1 %v928_v0 }
 0x282   :  { %864 = vmatpush3.msra.mxu1 %v1000_v9 }
 0x283   :  { %868 = vmatprep.subr.bf16.mxu1 %v928_v0 }
 0x339   :  { %v336_v44 = vpop.f32.mrf.mxu1 }
 0x33a   :  { %v340_v45 = vmul.f32 %v336_v44, %v336_v44  ;;  %v345_v51 = vsub.f32 %v256_v37, %v336_v44 }
 0x33b   :  { %v844_v46 = vpop.f32.mrf.mxu1 }
 0x33c   :  { %v342_v47 = vrot.slane %v340_v45, 7  ;;  %v44_v45 = vld [vmem:[%s1127_s2 + $0x2d] sm:$0x1] }
 0x33e   :  { %v344_v48 = vsub.f32 %v336_v44, %v342_v47  ;;  %v43_v44 = vld [vmem:[%s1127_s2 + $0x2c] sm:$0x1] }
 0x340   :  { %v346_v49 = vadd.f32 1e-05, %v344_v48 }
 0x342   :  { %916 = vrsqrt.f32 %v346_v49 }
 0x34f   :  { %v917_v50 = vpop.eup %916 }
 0x350   :  { %v349_v52 = vrot.slane %v917_v50, 1  ;;  %v711_v50 = vlaneseq }
 0x352   :  { %v351_v54 = vmul.f32 %v349_v52, %v345_v51  ;;  %v712_v51 = vand.u32 127, %v711_v50  ;;  %v45_v52 = vld [vmem:[%s1127_s2 + $0x2e] sm:$0x1] }
 0x354   :  { %v352_v56 = vmul.f32 %v351_v54, %v41_v53  ;;  %vm713_vm5 = vcmp.lt.s32.totalorder %v712_v51, 9  ;;  %vm714_vm7 = vcmp.eq.s32.totalorder %v712_v51, 9 }
 0x356   :  { %v353_v57 = vadd.f32 %v352_v56, %v42_v55 }
 0x358   :  { %v354_v58 = vadd.f32 %v353_v57, %v198_v35 }
 0x35a   :  { %v355_v59 = vmax.f32 %v354_v58, 0.0 }
 0x35c   :  { %v356_v60 = vpack.c.bf16 %v355_v59, %v355_v59 }
 0x35e   :  { %852 = vmatmul.mubr.msk.bf16.vlgmr.msra.gmra.mxu0 %vm110_vm3, %v356_v60 }
 0x35f   :  { %897 = vmatprep.mubr.msk.bf16.mxu0 %vm929_vm0, %v928_v0 }
 0x41e   :  { %v394_v61 = vpop.f32.mrf.mxu0 }
 0x41f   :  { %v400_v62 = vmul.f32 %v394_v61, %v394_v61 }
 0x420   :  { %v853_v63 = vpop.f32.mrf.mxu0 }
 0x421   :  { %v402_v1 = vrot.slane %v400_v62, 7 }
 0x422   :  { %v397_v2 = vpop.f32.mrf.mxu0 }
 0x423   :  { %v404_v3 = vsel %vm108_vm2, %v394_v61, %v402_v1 }
 0x424   :  { %v854_v6 = vpop.f32.mrf.mxu0  ;;  %866 = vmatmul.mubr.msk.f32.vlgmr.msra.gmra.mxu1 %vm110_vm3, %v404_v3 }
 0x425   :  { %874 = vmatprep.mubr.msk.bf16.mxu1 %vm929_vm0, %v928_v0  ;;  %869 = vmatpush3.bf16.msra.mxu1 %v514_v11 }
 0x426   :  { %870 = vmatprep.subr.bf16.mxu1 %v928_v0 }
 0x429   :  { %871 = vmatpush3.bf16.msra.mxu1 %v909_v12 }
 0x42a   :  { %872 = vmatprep.subr.bf16.mxu1 %v928_v0 }
 0x42d   :  { %873 = vmatpush3.bf16.msra.mxu1 %v910_v13 }
 0x42e   :  { %878 = vmatprep.subr.mxu1 %v928_v0 }
 0x4e4   :  { %v474_v14 = vpop.f32.mrf.mxu1 }
 0x4e5   :  { %v478_v15 = vmul.f32 %v474_v14, %v474_v14  ;;  %v483_v21 = vsub.f32 %v394_v61, %v474_v14 }
 0x4e6   :  { %v867_v16 = vpop.f32.mrf.mxu1 }
 0x4e7   :  { %v480_v17 = vrot.slane %v478_v15, 7 }
 0x4e9   :  { %v482_v18 = vsub.f32 %v474_v14, %v480_v17 }
 0x4eb   :  { %v484_v19 = vadd.f32 1e-05, %v482_v18 }
 0x4ed   :  { %918 = vrsqrt.f32 %v484_v19 }
 0x4fa   :  { %v919_v20 = vpop.eup %918 }
 0x4fb   :  { %v487_v22 = vrot.slane %v919_v20, 1 }
 0x4fd   :  { %v489_v23 = vmul.f32 %v487_v22, %v483_v21 }
 0x4ff   :  { %v490_v24 = vmul.f32 %v489_v23, %v41_v53 }
 0x501   :  { %v491_v25 = vadd.f32 %v490_v24, %v42_v55 }
 0x503   :  { %v492_v26 = vadd.f32 %v491_v25, %v355_v59 }
 0x505   :  { %v493_v27 = vmax.f32 %v492_v26, 0.0 }
 0x507   :  { %v494_v28 = vpack.c.bf16 %v493_v27, %v493_v27 }
 0x509   :  { %875 = vmatmul.mubr.msk.bf16.vlgmr.msra.gmra.mxu1 %vm110_vm3, %v494_v28 }
 0x50a   :  { %879 = vmatpush3.msra.mxu1 %v968_v4  ;;  %888 = vmatprep.mubr.msk.f32.mxu1 %vm929_vm0, %v928_v0 }
 0x50b   :  { %880 = vmatprep.subr.mxu1 %v928_v0 }
 0x50c   :  { %881 = vmatpush3.msra.mxu1 %v973_v5 }
 0x50d   :  { %882 = vmatprep.subr.mxu1 %v928_v0 }
 0x50e   :  { %883 = vmatpush3.msra.mxu1 %v986_v7  ;;  %v911_v7 = vld [vmem:[%s1125_s1 + $0x48] ss:$0 sps:$4 sm:$0xff]  }
 0x50f   :  { %884 = vmatprep.subr.mxu1 %v928_v0 }
 0x510   :  { %885 = vmatpush3.msra.mxu1 %v993_v8  ;;  %v669_v8 = vsel %vm218_vm4, %v911_v7, 0 }
 0x511   :  { %886 = vmatprep.subr.mxu1 %v928_v0  ;;  %892 = vmatpush3.bf16.msra.mxu0 %v669_v8 }
 0x512   :  { %887 = vmatpush3.msra.mxu1 %v1000_v9  ;;  %893 = vmatprep.subr.bf16.mxu0 %v928_v0  ;;  %v912_v9 = vld [vmem:[%s1125_s1 + $0x40] sm:$0xff]  }
 0x515   :  { %894 = vmatpush3.bf16.msra.mxu0 %v912_v9 }
 0x516   :  { %895 = vmatprep.subr.bf16.mxu0 %v928_v0 }
 0x519   :  { %896 = vmatpush3.bf16.msra.mxu0 %v913_v34 }
 0x5c9   :  { %v550_v4 = vpop.f32.mrf.mxu1 }
 0x5ca   :  { %v556_v29 = vmul.f32 %v550_v4, %v550_v4 }
 0x5cb   :  { %v876_v30 = vpop.f32.mrf.mxu1 }
 0x5cc   :  { %v558_v31 = vrot.slane %v556_v29, 7 }
 0x5cd   :  { %v553_v32 = vpop.f32.mrf.mxu1 }
 0x5ce   :  { %v560_v33 = vsel %vm108_vm2, %v550_v4, %v558_v31 }
 0x5cf   :  { %v877_v5 = vpop.f32.mrf.mxu1  ;;  %889 = vmatmul.mubr.msk.f32.vlgmr.msra.gmra.mxu1 %vm110_vm3, %v560_v33 }
 0x68f   :  { %v630_v35 = vpop.f32.mrf.mxu1 }
 0x690   :  { %v634_v36 = vmul.f32 %v630_v35, %v630_v35  ;;  %v639_v42 = vsub.f32 %v550_v4, %v630_v35 }
 0x691   :  { %v890_v37 = vpop.f32.mrf.mxu1 }
 0x692   :  { %v636_v38 = vrot.slane %v634_v36, 7 }
 0x694   :  { %v638_v39 = vsub.f32 %v630_v35, %v636_v38 }
 0x696   :  { %v640_v40 = vadd.f32 1e-05, %v638_v39 }
 0x698   :  { %920 = vrsqrt.f32 %v640_v40 }
 0x6a5   :  { %v921_v41 = vpop.eup %920 }
 0x6a6   :  { %v643_v43 = vrot.slane %v921_v41, 1 }
 0x6a8   :  { %v645_v0 = vmul.f32 %v643_v43, %v639_v42 }
 0x6aa   :  { %v646_v46 = vmul.f32 %v645_v0, %v43_v44 }
 0x6ac   :  { %v647_v47 = vadd.f32 %v646_v46, %v44_v45 }
 0x6ae   :  { %v648_v48 = vmax.f32 %v647_v47, 0.0 }
 0x6b0   :  { %v649_v49 = vpack.c.bf16 %v648_v48, %v648_v48 }
 0x6b2   :  { %898 = vmatmul.mubr.msk.bf16.vlgmr.msra.gmra.mxu0 %vm110_vm3, %v649_v49 }
 0x772   :  { %v705_v53 = vpop.f32.mrf.mxu0 }
 0x773   :  { %v706_v54 = vadd.f32 %v705_v53, %v45_v52 }
 0x774   :  { %v899_v55 = vpop.f32.mrf.mxu0 }
 0x775   :  { %v715_v56 = vsel %vm713_vm5, %v706_v54, -1e+30 }
 0x776   :  { %v708_v57 = vpop.f32.mrf.mxu0  ;;  %v717_v58 = vsel %vm716_vm6, %v715_v56, -inf }
 0x777   :  { %718 = vmax.xlane.f32.xlu0 %v717_v58 }
 0x778   :  { %v900_v59 = vpop.f32.mrf.mxu0 }
 0x800   :  { %v719_v60 = vpop.xlane.xlu0 %718 }
 0x801   :  { %v720_v61 = vsub.f32 %v706_v54, %v719_v60 }
 0x803   :  { %v721_v62 = vmul.f32 1.442695, %v720_v61 }
 0x805   :  { %922 = vpow2.f32 %v721_v62 }
 0x806   :  { %924 = vtanh.f32 %v706_v54 }
 0x812   :  { %v923_v63 = vpop.eup %922 }
 0x813   :  { %v723_v1 = vsel %vm713_vm5, %v923_v63, 0.0  ;;  %v925_v6 = vpop.eup %924 }
 0x814   :  { %v724_v2 = vsel %vm716_vm6, %v723_v1, 0.0  ;;  %v730_v12 = vsel %vm714_vm7, %v925_v6, 0.0 }
 0x815   :  { %725 = vadd.xlane.f32.xlu0 %v724_v2 }
 0x89e   :  { %v726_v3 = vpop.xlane.xlu0 %725 }
 0x89f   :  { %926 = vrcp.f32 %v726_v3 }
 0x8ac   :  { %v927_v10 = vpop.eup %926 }
 0x8ad   :  { %v728_v11 = vmul.f32 %v927_v10, %v723_v1 }
 0x8af   :  { %v731_v13 = vsel %vm713_vm5, %v728_v11, %v730_v12 }
 0x8b0   :  { %733 = vst.msk [vmem:[%s1128_s3] sm:$0x1] %vm732_vm8, %v731_v13 }

</bundles_post_ra>
